<compile_context>
chip_gen: v7x
topology: tpu7x:2x2x1
jax: 0.10.0
libtpu: 0.0.40
codegen_flags: <defaults>
</compile_context>

<pallas_src>
import jax
import jax.numpy as jnp
from jax import lax
from jax.experimental import pallas as pl
from jax.experimental.pallas import tpu as pltpu

_F = 5          # real feature width of the model
_FP = 8         # feature width padded to the sublane multiple
_LANE = 128     # lane width
_MAX_BT = 65536  # VMEM guard: 8*65536*4 B = 2 MiB/tile -> ~8 MiB double-buffered


def _round_up(x, m):
    return ((x + m - 1) // m) * m


def _nested_mlp_kernel(x_ref, w_ref, o_ref):
    """x_ref: [8, bt] (features x batch-tile), w_ref: [2, 8, 8], o_ref: [8, bt]."""
    x = x_ref[...]
    # Force the bias row (row _F) to 1.0; also neutralises any junk there.
    row = lax.broadcasted_iota(jnp.int32, x.shape, 0)
    x = jnp.where(row == _F, jnp.float32(1.0), x)

    # sub1: Linear(5,5)+bias (bias folded via the ones-row) then ReLU.
    # w_slab[0][_F,_F] == 1, so the ones-row passes through ReLU unchanged.
    h = jnp.dot(w_ref[0], x, preferred_element_type=jnp.float32)
    h = jnp.maximum(h, 0.0)

    # fused sub2.fc1 ∘ sub2.fc2 ∘ fc3 : single Linear(5,5)+bias (bias folded).
    y = jnp.dot(w_ref[1], h, preferred_element_type=jnp.float32)
    o_ref[...] = y.astype(o_ref.dtype)


def fuse_and_pack_params(params):
    """Fuse the 3 trailing affine layers and pack weights+biases into one slab.

    Returns w_slab [2, 8, 8] (f32) with weights stored [out, in] and biases in
    column _F (the ones-row trick); padded rows/cols are zero.
    """
    (w1, b1), (w2, b2), (w3, b3), (w4, b4) = (
        params["sub1_fc"], params["sub2_fc1"], params["sub2_fc2"], params["fc3"])

    w234 = w2 @ w3 @ w4                        # [5, 5]
    b234 = b2 @ w3 @ w4 + b3 @ w4 + b4         # [1, 5]

    w_slab = jnp.zeros((2, _FP, _FP), jnp.float32)
    w_slab = w_slab.at[0, :_F, :_F].set(w1.T)
    w_slab = w_slab.at[0, :_F, _F].set(b1[0])     # bias of layer 1
    w_slab = w_slab.at[0, _F, _F].set(1.0)        # keep the ones-row alive
    w_slab = w_slab.at[1, :_F, :_F].set(w234.T)
    w_slab = w_slab.at[1, :_F, _F].set(b234[0])   # fused bias of layers 2-4
    return w_slab


def _choose_tile(batch, batch_tile):
    """Pick a lane-aligned batch tile and padded batch size."""
    bp0 = _round_up(max(batch, 1), _LANE)                 # minimal padded batch
    cap = _round_up(max(int(batch_tile), _LANE), _LANE)   # lane-aligned request
    cap = min(cap, _MAX_BT)                               # VMEM guard (v7x: 64 MiB)
    if bp0 >= 2 * _LANE:
        # Guarantee >= 2 grid steps so both v7x TensorCores get work.
        cap = min(cap, _round_up(pl.cdiv(bp0, 2), _LANE))
    bt = min(cap, bp0)
    bp = _round_up(batch, bt)
    return bt, bp


def nested_mlp_feature_major(x_fm, w_slab, *, batch_tile=16384):
    """Transpose-free entry point.

    x_fm: [8, batch] f32, rows 0..4 = features (rows 5..7 are ignored).
    Returns [8, batch] f32 with rows 0..4 = outputs, rows 5..7 = 0.
    """
    fp, batch = x_fm.shape
    assert fp == _FP, f"expected leading dim {_FP}, got {fp}"

    bt, bp = _choose_tile(batch, batch_tile)
    if bp != batch:
        x_fm = jnp.pad(x_fm, ((0, 0), (0, bp - batch)))

    grid = (bp // bt,)
    out = pl.pallas_call(
        _nested_mlp_kernel,
        out_shape=jax.ShapeDtypeStruct((_FP, bp), jnp.float32),
        grid=grid,
        in_specs=[
            pl.BlockSpec((_FP, bt), lambda i: (0, i)),         # activations: tiled over batch
            pl.BlockSpec((2, _FP, _FP), lambda i: (0, 0, 0)),  # weights: VMEM-resident
        ],
        out_specs=pl.BlockSpec((_FP, bt), lambda i: (0, i)),
        compiler_params=pltpu.CompilerParams(
            dimension_semantics=("parallel",)),
    )(x_fm, w_slab)
    return out[:, :batch]


def annotated_nested_model(x, params, *, batch_tile=16384):
    """PyTorch-layout wrapper. x: [batch, 5] f32 -> [batch, 5] f32.

    The transpose/pad here is the cost of the [batch, 5] interface; callers that
    can hold activations feature-major should use nested_mlp_feature_major().
    """
    batch = x.shape[0]
    w_slab = fuse_and_pack_params(params)
    x_fm = jnp.zeros((_FP, batch), jnp.float32).at[:_F, :].set(x.T)
    out_fm = nested_mlp_feature_major(x_fm, w_slab, batch_tile=batch_tile)
    return out_fm[:_F, :].T


def _init_linear(key, fan_in, fan_out):
    """Deterministic init mimicking torch.nn.Linear (uniform +-1/sqrt(fan_in)).

    Returns weight as [in, out] (for x @ W) and bias [1, out].
    """
    kw, kb = jax.random.split(key)
    bound = 1.0 / jnp.sqrt(float(fan_in))
    w = jax.random.uniform(kw, (fan_in, fan_out), jnp.float32, -bound, bound)
    b = jax.random.uniform(kb, (1, fan_out), jnp.float32, -bound, bound)
    return w, b


def make_params(key):
    k1, k2, k3, k4 = jax.random.split(key, 4)
    return {
        "sub1_fc": _init_linear(k1, 5, 5),   # LinearReluModel.fc
        "sub2_fc1": _init_linear(k2, 5, 8),  # TwoLayerLinearModel.fc1
        "sub2_fc2": _init_linear(k3, 8, 5),  # TwoLayerLinearModel.fc2
        "fc3": _init_linear(k4, 5, 5),       # QuantWrapper(Linear(5,5))
    }


def _reference(x, params):
    """Unfused reference, layer by layer (matches the PyTorch forward)."""
    (w1, b1), (w2, b2), (w3, b3), (w4, b4) = (
        params["sub1_fc"], params["sub2_fc1"], params["sub2_fc2"], params["fc3"])
    h = jnp.maximum(x @ w1 + b1, 0.0)
    h = h @ w2 + b2
    h = h @ w3 + b3
    return h @ w4 + b4


if __name__ == "__main__":
    key = jax.random.PRNGKey(0)
    k_params, k_x1, k_x2 = jax.random.split(key, 3)
    params = make_params(k_params)

    # Small-batch check (matches the module's tiny-input usage): grid = (1,).
    batch = 8
    x = jax.random.normal(k_x1, (batch, 5), dtype=jnp.float32)
    out = jax.block_until_ready(annotated_nested_model(x, params))
    ref = _reference(x, params)
    assert out.shape == (batch, 5)
    # Host fusion re-associates float sums; tolerance stays tight.
    assert jnp.allclose(out, ref, atol=1e-4, rtol=1e-5), "mismatch vs reference (batch=8)"

    # Multi-tile / ragged-batch check: exercises lane padding and grid >= 2
    # (both TensorCores participate on v7x).
    batch2 = 300
    x2 = jax.random.normal(k_x2, (batch2, 5), dtype=jnp.float32)
    out2 = jax.block_until_ready(annotated_nested_model(x2, params))
    ref2 = _reference(x2, params)
    assert out2.shape == (batch2, 5)
    assert jnp.allclose(out2, ref2, atol=1e-4, rtol=1e-5), "mismatch vs reference (batch=300)"

    print("KERNEL_OK")
</pallas_src>

<mosaic_0001>
module attributes {stable_mosaic.version = 11 : i64} {
  func.func @_nested_mlp_kernel(%arg0: i32, %arg1: memref<8x128xf32, #tpu.memory_space<vmem>>, %arg2: memref<2x8x8xf32, #tpu.memory_space<vmem>>, %arg3: memref<8x128xf32, #tpu.memory_space<vmem>>) attributes {dimension_semantics = [#tpu.dimension_semantics<parallel>], iteration_bounds = array<i64: 1>, scalar_prefetch = 0 : i64, scratch_operands = 0 : i64, tpu.core_type = #tpu.core_type<tc>, window_params = [{transform_indices = @transform_0, window_bounds = array<i64: 8, 128>}, {pipeline_mode = #tpu.pipeline_mode<synchronous>, transform_indices = @transform_1, window_bounds = array<i64: 2, 8, 8>}, {transform_indices = @transform_2, window_bounds = array<i64: 8, 128>}]} {
    %c0 = arith.constant 0 : index
    %c0_0 = arith.constant 0 : index
    %0 = vector.load %arg1[%c0, %c0_0] : memref<8x128xf32, #tpu.memory_space<vmem>>, vector<8x128xf32>
    %1 = tpu.iota {dimensions = array<i32: 0>} : vector<8x128xi32>
    %c5_i32 = arith.constant 5 : i32
    %2 = vector.broadcast %c5_i32 : i32 to vector<8x128xi32>
    %3 = arith.cmpi eq, %1, %2 : vector<8x128xi32>
    %cst = arith.constant 1.000000e+00 : f32
    %4 = vector.broadcast %cst : f32 to vector<8x128xf32>
    %5 = arith.select %3, %4, %0 : vector<8x128xi1>, vector<8x128xf32>
    %c0_1 = arith.constant 0 : index
    %c0_2 = arith.constant 0 : index
    %c0_3 = arith.constant 0 : index
    %6 = vector.load %arg2[%c0_1, %c0_2, %c0_3] : memref<2x8x8xf32, #tpu.memory_space<vmem>>, vector<1x8x8xf32>
    %7 = vector.shape_cast %6 : vector<1x8x8xf32> to vector<8x8xf32>
    %cst_4 = arith.constant dense<0.000000e+00> : vector<8x128xf32>
    %8 = tpu.matmul %7, %5, %cst_4 {dimension_numbers = #tpu.dot_dimension_numbers<[1], [0], [0], [1], [0, 0, 1, 1], [], []>} : vector<8x8xf32>, vector<8x128xf32>, vector<8x128xf32> -> vector<8x128xf32>
    %cst_5 = arith.constant 0.000000e+00 : f32
    %9 = vector.broadcast %cst_5 : f32 to vector<8x128xf32>
    %10 = arith.maximumf %8, %9 : vector<8x128xf32>
    %c1 = arith.constant 1 : index
    %c0_6 = arith.constant 0 : index
    %c0_7 = arith.constant 0 : index
    %11 = vector.load %arg2[%c1, %c0_6, %c0_7] : memref<2x8x8xf32, #tpu.memory_space<vmem>>, vector<1x8x8xf32>
    %12 = vector.shape_cast %11 : vector<1x8x8xf32> to vector<8x8xf32>
    %cst_8 = arith.constant dense<0.000000e+00> : vector<8x128xf32>
    %13 = tpu.matmul %12, %10, %cst_8 {dimension_numbers = #tpu.dot_dimension_numbers<[1], [0], [0], [1], [0, 0, 1, 1], [], []>} : vector<8x8xf32>, vector<8x128xf32>, vector<8x128xf32> -> vector<8x128xf32>
    %c0_9 = arith.constant 0 : index
    %c0_10 = arith.constant 0 : index
    %14 = vector.load %arg3[%c0_9, %c0_10] : memref<8x128xf32, #tpu.memory_space<vmem>>, vector<8x128xf32>
    tpu.vector_store %arg3[%c0_9, %c0_10], %13 {strides = array<i32>} : memref<8x128xf32, #tpu.memory_space<vmem>>, vector<8x128xf32>,
    return
  }
  func.func @transform_0(%arg0: i32) -> (i32, i32) {
    %c0_i32 = arith.constant 0 : i32
    %c0_i32_0 = arith.constant 0 : i32
    return %c0_i32, %arg0 : i32, i32
  }
  func.func @transform_1(%arg0: i32) -> (i32, i32, i32) {
    %c0_i32 = arith.constant 0 : i32
    %c0_i32_0 = arith.constant 0 : i32
    %c0_i32_1 = arith.constant 0 : i32
    %c0_i32_2 = arith.constant 0 : i32
    return %c0_i32, %c0_i32_0, %c0_i32_1 : i32, i32, i32
  }
  func.func @transform_2(%arg0: i32) -> (i32, i32) {
    %c0_i32 = arith.constant 0 : i32
    %c0_i32_0 = arith.constant 0 : i32
    return %c0_i32, %arg0 : i32, i32
  }
}

</mosaic_0001>

<bundles_post_ra>
// kernel: tpu_custom_call.1
= control target key start
LH: loop header
LB: loop body
LE: loop exit
PB: predicated region body
PF: predicated region fallthrough
CT: control target
= control target key end

     0   :  { %7 = vsyncpa [#allocation3], 0  ;;  %s371_s0 = inlined_call_operand.hbm [shape: f32[8,128], index: 0, kind: input, shape index: {}]   ;;  %s372_s1 = inlined_call_operand.hbm [shape: f32[2,8,8], index: 1, kind: input, shape index: {}]   ;;  %s373_s2 = inlined_call_operand.hbm [shape: f32[8,128], index: 2, kind: output, shape index: {}]  }
   0x1   :  { %8 = vsyncpa [#allocation6], 0 }
   0x2   :  { %9 = vsyncpa [#allocation4], 0  ;;  %s306_s9 = smov [#allocation2]   ;;  %s307_s11 = smov [#allocation5]  }
   0x3   :  { %s16_s10 = sshll.u32 %s306_s9, 4  ;;  %s25_s12 = sshll.u32 %s307_s11, 4  ;;  %s17_s10 = int_to_ptr.vmem [resolvable:$true] %s16_s10  ;;  %s328_s12 = int_to_ptr.vmem [resolvable:$true] %s25_s12 }
   0x4   :  { %s234_s15 = scalar_lea.hbm %s371_s0, 128 }
   0x5   :  { %p235_p0 = scmp.ne.s32.totalorder %s371_s0, %s234_s15  ;;  %p238_p1 = scmp.lt.u32.totalorder %s234_s15, %s371_s0 }
   0x7   :  { %p240_p2 = pnand %p238_p1, %p235_p0 }
   0x9   :  { %243 = shalt.err (!%p240_p2)
}
   0xa   :  { %s244_s20 = scalar_lea.vmem %s17_s10, 128  ;;  %p249_p4 = scmp.lt.s32.totalorder %s17_s10, %s17_s10 }
   0xb   :  { %p245_p3 = scmp.ne.s32.totalorder %s17_s10, %s244_s20  ;;  %p250_p5 = scmp.lt.s32.totalorder %s244_s20, %s244_s20 }
   0xd   :  { %p251_p6 = por %p250_p5, %p249_p4 }
   0xf   :  { %p252_p7 = pnand %p251_p6, %p245_p3 }
  0x11   :  { %255 = shalt.err (!%p252_p7)
}
  0x12   :  { %19 = dma.hbm_to_vmem [thread:$0]  %s371_s0, 128, %s17_s10, [#allocation3]  }
  0x13   :  { %s256_s25 = scalar_lea.hbm %s372_s1, 256 }
  0x14   :  { %p257_p8 = scmp.ne.s32.totalorder %s372_s1, %s256_s25  ;;  %p260_p9 = scmp.lt.u32.totalorder %s256_s25, %s372_s1 }
  0x16   :  { %p262_p10 = pnand %p260_p9, %p257_p8 }
  0x18   :  { %265 = shalt.err (!%p262_p10)
}
  0x19   :  { %s266_s30 = scalar_lea.vmem %s328_s12, 256  ;;  %p271_p12 = scmp.lt.s32.totalorder %s328_s12, %s328_s12 }
  0x1a   :  { %p267_p11 = scmp.ne.s32.totalorder %s328_s12, %s266_s30  ;;  %p272_p13 = scmp.lt.s32.totalorder %s266_s30, %s266_s30 }
  0x1c   :  { %p273_p0 = por %p272_p13, %p271_p12 }
  0x1e   :  { %p274_p1 = pnand %p273_p0, %p267_p11 }
  0x20   :  { %277 = shalt.err (!%p274_p1)
}
  0x21   :  { %s308_s0 = smov 128   ;;  %s309_s3 = smov 8  }
  0x22   :  { %31 = dma.hbm_to_vmem [thread:$0]  %s372_s1, 256, %s328_s12, [#allocation6], %s308_s0, %s308_s0, %s309_s3  }
  0x23   :  { %300 = dma.done.wait [#allocation3], 128  }
  0x24   :  { %301 = vsyncadd [#allocation3], 4294967168 }
  0x25   :  { %302 = dma.done.wait [#allocation6], 256  }
  0x26   :  { %303 = vsyncadd [#allocation6], 4294967040  ;;  %v39_v0 = vlaneseq  ;;  %v310_v1 = vmov 0.0   ;;  %vm311_vm0 = vmmov 0   ;;  %v38_v3 = vld [vmem:[#allocation2] sm:$0xff]  ;;  %v43_v4 = vld [vmem:[#allocation5] sm:$0xff] }
  0x27   :  { %217 = vmatprep.subr.mxu0 %v310_v1  ;;  %219 = vmatprep.mubr.msk.f32.mxu0 %vm311_vm0, %v310_v1  ;;  %vm44_vm2 = vcmask 64512   ;;  %v120_v9 = vld [vmem:[#allocation5 + $0x8] sm:$0xff]  ;;  %s312_s1 = smov [#allocation7]  }
  0x28   :  { %v40_v2 = vshrl.u32 %v39_v0, 7  ;;  %222 = vmatprep.subr.mxu1 %v310_v1  ;;  %224 = vmatprep.mubr.msk.f32.mxu1 %vm311_vm0, %v310_v1  ;;  %s201_s6 = sshll.u32 %s312_s1, 4  ;;  %s202_s6 = int_to_ptr.vmem [resolvable:$true] %s201_s6 }
  0x29   :  { %s278_s7 = scalar_lea.vmem %s202_s6, 128  ;;  %p283_p3 = scmp.lt.s32.totalorder %s202_s6, %s202_s6 }
  0x2a   :  { %vm41_vm1 = vcmp.eq.s32.totalorder %v40_v2, 5  ;;  %p279_p2 = scmp.ne.s32.totalorder %s202_s6, %s278_s7  ;;  %p284_p4 = scmp.lt.s32.totalorder %s278_s7, %s278_s7 }
  0x2b   :  { %v42_v5 = vsel %vm41_vm1, 1.0, %v38_v3 }
  0x2c   :  { %218 = vmatpush3.msra.mxu0 %v42_v5  ;;  %p285_p5 = por %p284_p4, %p283_p3 }
  0x2d   :  { %220 = vmatmul.mubr.msk.f32.vlgmr.msra.gmra.mrb[0].mxu0 %vm44_vm2, %v43_v4 }
  0x2e   :  { %p286_p6 = pnand %p285_p5, %p279_p2 }
 0x100   :  { %v114_v6 = vpop.f32.mrb[0].mxu0 }
 0x101   :  { %v118_v7 = vmax.f32 %v114_v6, 0.0  ;;  %v221_v8 = vpop.f32.mrb[1].mxu0 }
 0x103   :  { %223 = vmatpush3.msra.mxu1 %v118_v7 }
 0x104   :  { %225 = vmatmul.mubr.msk.f32.vlgmr.msra.gmra.mrb[0].mxu1 %vm44_vm2, %v120_v9 }
 0x1d7   :  { %v190_v10 = vpop.f32.mrb[0].mxu1 }
 0x1d8   :  { %194 = vst [vmem:[#allocation7] sm:$0xff] %v190_v10  ;;  %v226_v11 = vpop.f32.mrb[1].mxu1 }
 0x1d9   :  { %289 = shalt.err (!%p286_p6)
}
 0x1da   :  { %s290_s10 = scalar_lea.hbm %s373_s2, 128 }
 0x1db   :  { %p291_p7 = scmp.ne.s32.totalorder %s373_s2, %s290_s10  ;;  %p294_p8 = scmp.lt.u32.totalorder %s290_s10, %s373_s2 }
 0x1dd   :  { %p296_p9 = pnand %p294_p8, %p291_p7 }
 0x1df   :  { %299 = shalt.err (!%p296_p9)
}
 0x1e0   :  { %204 = dma.vmem_to_hbm [thread:$0]  %s202_s6, 128, %s373_s2, [#allocation4]  }
 0x1e1   :  { %304 = dma.done.wait [#allocation4], 128  }
 0x1e2   :  { %305 = vsyncadd [#allocation4], 4294967168 }
 0x1e3   :  { %208 = vsyncpa [#allocation3], 1 }
 0x1e4   :  { %209 = vsyncpa [#allocation6], 1 }
 0x1e5   :  { %210 = vsyncpa [#allocation4], 1 }

</bundles_post_ra>
